<compile_context>
chip_gen: v6e
topology: v6e:2x2x1
jax: 0.10.0
libtpu: 0.0.40
codegen_flags: <defaults>
</compile_context>

<pallas_src>
import functools

import jax
import jax.numpy as jnp
from jax.experimental import pallas as pl
from jax.experimental.pallas import tpu as pltpu


def _mlp_kernel(x_ref, w1_ref, b1_ref, w2_ref, b2_ref, w3_ref, b3_ref,
                w4_ref, b4_ref, o_ref):
    # Shapes (features, batch_tile): x (1,T), h1 (19,T), h2/h3 (18,T), y (1,T).
    x = x_ref[...]                                              # (1, T)

    # Layer 1 (1 -> 19): K=1 contraction == broadcast multiply-add on the VPU.
    h = jnp.maximum(w1_ref[...] * x + b1_ref[...], 0.0)        # (19, T)

    # Layers 2 & 3 (19 -> 18 -> 18): small MXU matmuls, f32 accumulate.
    h = jnp.maximum(
        jnp.dot(w2_ref[...], h, preferred_element_type=jnp.float32)
        + b2_ref[...], 0.0)                                     # (18, T)
    h = jnp.maximum(
        jnp.dot(w3_ref[...], h, preferred_element_type=jnp.float32)
        + b3_ref[...], 0.0)                                     # (18, T)

    # Output layer (18 -> 1): VPU multiply + sublane (XLU) reduction, keeping
    # the tiny N=1 matmul off the MXU (which is the busiest unit here).
    y = jnp.sum(h * w4_ref[...], axis=0, keepdims=True) + b4_ref[...]  # (1, T)
    o_ref[...] = y.astype(o_ref.dtype)


@functools.partial(jax.jit, static_argnames=("tile",))
def nn_deep_forward(x, params, tile=16384):
    """x: (N, 1) float32.  Returns (N, 1) float32.

    params layout (kernel-friendly, features on the leading axis):
      w1 (19,1)  b1 (19,1)   w2 (18,19) b2 (18,1)
      w3 (18,18) b3 (18,1)   w4 (18,1)  b4 (1,1)
    """
    n = x.shape[0]
    lane = 128
    # Batch-on-lanes: round N up to a lane multiple, cap the tile, and pad so
    # the grid covers everything with full static tiles.
    n_lane = max(lane, pl.cdiv(n, lane) * lane)
    tile = min(tile, n_lane)
    n_pad = pl.cdiv(n_lane, tile) * tile

    x_t = jnp.pad(x.reshape(1, n).astype(jnp.float32),
                  ((0, 0), (0, n_pad - n)))                     # (1, n_pad)

    w1, b1 = params["w1"], params["b1"]
    w2, b2 = params["w2"], params["b2"]
    w3, b3 = params["w3"], params["b3"]
    w4, b4 = params["w4"], params["b4"]

    grid = (n_pad // tile,)
    # Weights/biases: full-array blocks with a constant index_map -> fetched
    # once, then VMEM-resident for the whole grid (no re-DMA between steps).
    resident = lambda arr: pl.BlockSpec(arr.shape, lambda i: (0, 0))
    in_specs = [
        pl.BlockSpec((1, tile), lambda i: (0, i)),              # x tile (lane-dense)
        resident(w1), resident(b1),
        resident(w2), resident(b2),
        resident(w3), resident(b3),
        resident(w4), resident(b4),
    ]
    out_spec = pl.BlockSpec((1, tile), lambda i: (0, i))        # y tile (lane-dense)

    y_t = pl.pallas_call(
        _mlp_kernel,
        out_shape=jax.ShapeDtypeStruct((1, n_pad), jnp.float32),
        grid=grid,
        in_specs=in_specs,
        out_specs=out_spec,
        compiler_params=pltpu.CompilerParams(
            dimension_semantics=("parallel",)),                 # megacore on v7x
    )(x_t, w1, b1, w2, b2, w3, b3, w4, b4)

    return y_t.reshape(n_pad, 1)[:n]


def init_params(key):
    """PyTorch nn.Linear-style init (U[-1/sqrt(fan_in), +]) in kernel layout."""
    # (out, in) weight shapes except w4 which is stored (in, 1) for the
    # in-kernel sublane reduction; biases stored (out, 1).
    specs = {
        "w1": ((19, 1), 1), "b1": ((19, 1), 1),
        "w2": ((18, 19), 19), "b2": ((18, 1), 19),
        "w3": ((18, 18), 18), "b3": ((18, 1), 18),
        "w4": ((18, 1), 18), "b4": ((1, 1), 18),
    }
    params = {}
    for name, (shape, fan_in) in specs.items():
        key, sub = jax.random.split(key)
        bound = 1.0 / jnp.sqrt(float(fan_in))
        params[name] = jax.random.uniform(sub, shape, jnp.float32, -bound, bound)
    return params


def reference_forward(x, params):
    """Pure-JAX reference in the standard (batch, features) layout."""
    h = jnp.maximum(x @ params["w1"].T + params["b1"].T, 0.0)   # (N, 19)
    h = jnp.maximum(h @ params["w2"].T + params["b2"].T, 0.0)   # (N, 18)
    h = jnp.maximum(h @ params["w3"].T + params["b3"].T, 0.0)   # (N, 18)
    return h @ params["w4"] + params["b4"]                      # (N, 1)


if __name__ == "__main__":
    key = jax.random.PRNGKey(0)
    kx1, kx2, kp = jax.random.split(key, 3)
    params = init_params(kp)

    # Small batch (single grid step, tile capped to 128 lanes).
    x_small = jax.random.normal(kx1, (8, 1), jnp.float32)
    out_small = jax.block_until_ready(nn_deep_forward(x_small, params))
    ref_small = reference_forward(x_small, params)
    assert out_small.shape == (8, 1)
    assert jnp.allclose(out_small, ref_small, atol=1e-4, rtol=1e-4)

    # Ragged batch exercising the multi-tile grid + padding path.
    x_big = jax.random.normal(kx2, (300, 1), jnp.float32)
    out_big = jax.block_until_ready(nn_deep_forward(x_big, params, tile=128))
    ref_big = reference_forward(x_big, params)
    assert out_big.shape == (300, 1)
    assert jnp.allclose(out_big, ref_big, atol=1e-4, rtol=1e-4)

    print("KERNEL_OK")
</pallas_src>

<mosaic_0001>
module attributes {stable_mosaic.version = 11 : i64} {
  func.func @_mlp_kernel(%arg0: i32, %arg1: memref<1x128xf32, #tpu.memory_space<vmem>>, %arg2: memref<19x1xf32, #tpu.memory_space<vmem>>, %arg3: memref<19x1xf32, #tpu.memory_space<vmem>>, %arg4: memref<18x19xf32, #tpu.memory_space<vmem>>, %arg5: memref<18x1xf32, #tpu.memory_space<vmem>>, %arg6: memref<18x18xf32, #tpu.memory_space<vmem>>, %arg7: memref<18x1xf32, #tpu.memory_space<vmem>>, %arg8: memref<18x1xf32, #tpu.memory_space<vmem>>, %arg9: memref<1x1xf32, #tpu.memory_space<vmem>>, %arg10: memref<1x128xf32, #tpu.memory_space<vmem>>) attributes {dimension_semantics = [#tpu.dimension_semantics<parallel>], iteration_bounds = array<i64: 1>, scalar_prefetch = 0 : i64, scratch_operands = 0 : i64, tpu.core_type = #tpu.core_type<tc>, window_params = [{transform_indices = @transform_0, window_bounds = array<i64: 1, 128>}, {pipeline_mode = #tpu.pipeline_mode<synchronous>, transform_indices = @transform_1, window_bounds = array<i64: 19, 1>}, {pipeline_mode = #tpu.pipeline_mode<synchronous>, transform_indices = @transform_2, window_bounds = array<i64: 19, 1>}, {pipeline_mode = #tpu.pipeline_mode<synchronous>, transform_indices = @transform_3, window_bounds = array<i64: 18, 19>}, {pipeline_mode = #tpu.pipeline_mode<synchronous>, transform_indices = @transform_4, window_bounds = array<i64: 18, 1>}, {pipeline_mode = #tpu.pipeline_mode<synchronous>, transform_indices = @transform_5, window_bounds = array<i64: 18, 18>}, {pipeline_mode = #tpu.pipeline_mode<synchronous>, transform_indices = @transform_6, window_bounds = array<i64: 18, 1>}, {pipeline_mode = #tpu.pipeline_mode<synchronous>, transform_indices = @transform_7, window_bounds = array<i64: 18, 1>}, {pipeline_mode = #tpu.pipeline_mode<synchronous>, transform_indices = @transform_8, window_bounds = array<i64: 1, 1>}, {transform_indices = @transform_9, window_bounds = array<i64: 1, 128>}]} {
    %c0 = arith.constant 0 : index
    %c0_0 = arith.constant 0 : index
    %0 = vector.load %arg1[%c0, %c0_0] : memref<1x128xf32, #tpu.memory_space<vmem>>, vector<1x128xf32>
    %c0_1 = arith.constant 0 : index
    %c0_2 = arith.constant 0 : index
    %1 = vector.load %arg2[%c0_1, %c0_2] : memref<19x1xf32, #tpu.memory_space<vmem>>, vector<19x1xf32>
    %2 = vector.broadcast %1 : vector<19x1xf32> to vector<19x128xf32>
    %3 = vector.broadcast %0 : vector<1x128xf32> to vector<19x128xf32>
    %4 = arith.mulf %2, %3 : vector<19x128xf32>
    %c0_3 = arith.constant 0 : index
    %c0_4 = arith.constant 0 : index
    %5 = vector.load %arg3[%c0_3, %c0_4] : memref<19x1xf32, #tpu.memory_space<vmem>>, vector<19x1xf32>
    %6 = vector.broadcast %5 : vector<19x1xf32> to vector<19x128xf32>
    %7 = arith.addf %4, %6 : vector<19x128xf32>
    %cst = arith.constant 0.000000e+00 : f32
    %8 = vector.broadcast %cst : f32 to vector<19x128xf32>
    %9 = arith.maximumf %7, %8 : vector<19x128xf32>
    %c0_5 = arith.constant 0 : index
    %c0_6 = arith.constant 0 : index
    %10 = vector.load %arg4[%c0_5, %c0_6] : memref<18x19xf32, #tpu.memory_space<vmem>>, vector<18x19xf32>
    %cst_7 = arith.constant dense<0.000000e+00> : vector<18x128xf32>
    %11 = tpu.matmul %10, %9, %cst_7 {dimension_numbers = #tpu.dot_dimension_numbers<[1], [0], [0], [1], [0, 0, 1, 1], [], []>} : vector<18x19xf32>, vector<19x128xf32>, vector<18x128xf32> -> vector<18x128xf32>
    %c0_8 = arith.constant 0 : index
    %c0_9 = arith.constant 0 : index
    %12 = vector.load %arg5[%c0_8, %c0_9] : memref<18x1xf32, #tpu.memory_space<vmem>>, vector<18x1xf32>
    %13 = vector.broadcast %12 : vector<18x1xf32> to vector<18x128xf32>
    %14 = arith.addf %11, %13 : vector<18x128xf32>
    %cst_10 = arith.constant 0.000000e+00 : f32
    %15 = vector.broadcast %cst_10 : f32 to vector<18x128xf32>
    %16 = arith.maximumf %14, %15 : vector<18x128xf32>
    %c0_11 = arith.constant 0 : index
    %c0_12 = arith.constant 0 : index
    %17 = vector.load %arg6[%c0_11, %c0_12] : memref<18x18xf32, #tpu.memory_space<vmem>>, vector<18x18xf32>
    %cst_13 = arith.constant dense<0.000000e+00> : vector<18x128xf32>
    %18 = tpu.matmul %17, %16, %cst_13 {dimension_numbers = #tpu.dot_dimension_numbers<[1], [0], [0], [1], [0, 0, 1, 1], [], []>} : vector<18x18xf32>, vector<18x128xf32>, vector<18x128xf32> -> vector<18x128xf32>
    %c0_14 = arith.constant 0 : index
    %c0_15 = arith.constant 0 : index
    %19 = vector.load %arg7[%c0_14, %c0_15] : memref<18x1xf32, #tpu.memory_space<vmem>>, vector<18x1xf32>
    %20 = vector.broadcast %19 : vector<18x1xf32> to vector<18x128xf32>
    %21 = arith.addf %18, %20 : vector<18x128xf32>
    %cst_16 = arith.constant 0.000000e+00 : f32
    %22 = vector.broadcast %cst_16 : f32 to vector<18x128xf32>
    %23 = arith.maximumf %21, %22 : vector<18x128xf32>
    %c0_17 = arith.constant 0 : index
    %c0_18 = arith.constant 0 : index
    %24 = vector.load %arg8[%c0_17, %c0_18] : memref<18x1xf32, #tpu.memory_space<vmem>>, vector<18x1xf32>
    %25 = vector.broadcast %24 : vector<18x1xf32> to vector<18x128xf32>
    %26 = arith.mulf %23, %25 : vector<18x128xf32>
    %cst_19 = arith.constant dense<0.000000e+00> : vector<128xf32>
    %27 = vector.multi_reduction <add>, %26, %cst_19 [0] : vector<18x128xf32> to vector<128xf32>
    %28 = vector.shape_cast %27 : vector<128xf32> to vector<1x128xf32>
    %c0_20 = arith.constant 0 : index
    %c0_21 = arith.constant 0 : index
    %29 = vector.load %arg9[%c0_20, %c0_21] : memref<1x1xf32, #tpu.memory_space<vmem>>, vector<1x1xf32>
    %30 = vector.broadcast %29 : vector<1x1xf32> to vector<1x128xf32>
    %31 = arith.addf %28, %30 : vector<1x128xf32>
    %c0_22 = arith.constant 0 : index
    %c0_23 = arith.constant 0 : index
    %32 = vector.load %arg10[%c0_22, %c0_23] : memref<1x128xf32, #tpu.memory_space<vmem>>, vector<1x128xf32>
    tpu.vector_store %arg10[%c0_22, %c0_23], %31 {strides = array<i32>} : memref<1x128xf32, #tpu.memory_space<vmem>>, vector<1x128xf32>,
    return
  }
  func.func @transform_0(%arg0: i32) -> (i32, i32) {
    %c0_i32 = arith.constant 0 : i32
    %c0_i32_0 = arith.constant 0 : i32
    return %c0_i32, %arg0 : i32, i32
  }
  func.func @transform_1(%arg0: i32) -> (i32, i32) {
    %c0_i32 = arith.constant 0 : i32
    %c0_i32_0 = arith.constant 0 : i32
    %c0_i32_1 = arith.constant 0 : i32
    return %c0_i32, %c0_i32_0 : i32, i32
  }
  func.func @transform_2(%arg0: i32) -> (i32, i32) {
    %c0_i32 = arith.constant 0 : i32
    %c0_i32_0 = arith.constant 0 : i32
    %c0_i32_1 = arith.constant 0 : i32
    return %c0_i32, %c0_i32_0 : i32, i32
  }
  func.func @transform_3(%arg0: i32) -> (i32, i32) {
    %c0_i32 = arith.constant 0 : i32
    %c0_i32_0 = arith.constant 0 : i32
    %c0_i32_1 = arith.constant 0 : i32
    return %c0_i32, %c0_i32_0 : i32, i32
  }
  func.func @transform_4(%arg0: i32) -> (i32, i32) {
    %c0_i32 = arith.constant 0 : i32
    %c0_i32_0 = arith.constant 0 : i32
    %c0_i32_1 = arith.constant 0 : i32
    return %c0_i32, %c0_i32_0 : i32, i32
  }
  func.func @transform_5(%arg0: i32) -> (i32, i32) {
    %c0_i32 = arith.constant 0 : i32
    %c0_i32_0 = arith.constant 0 : i32
    %c0_i32_1 = arith.constant 0 : i32
    return %c0_i32, %c0_i32_0 : i32, i32
  }
  func.func @transform_6(%arg0: i32) -> (i32, i32) {
    %c0_i32 = arith.constant 0 : i32
    %c0_i32_0 = arith.constant 0 : i32
    %c0_i32_1 = arith.constant 0 : i32
    return %c0_i32, %c0_i32_0 : i32, i32
  }
  func.func @transform_7(%arg0: i32) -> (i32, i32) {
    %c0_i32 = arith.constant 0 : i32
    %c0_i32_0 = arith.constant 0 : i32
    %c0_i32_1 = arith.constant 0 : i32
    return %c0_i32, %c0_i32_0 : i32, i32
  }
  func.func @transform_8(%arg0: i32) -> (i32, i32) {
    %c0_i32 = arith.constant 0 : i32
    %c0_i32_0 = arith.constant 0 : i32
    %c0_i32_1 = arith.constant 0 : i32
    return %c0_i32, %c0_i32_0 : i32, i32
  }
  func.func @transform_9(%arg0: i32) -> (i32, i32) {
    %c0_i32 = arith.constant 0 : i32
    %c0_i32_0 = arith.constant 0 : i32
    return %c0_i32, %arg0 : i32, i32
  }
}

</mosaic_0001>

<bundles_post_ra>
// kernel: nn_deep_forward.1
= control target key start
LH: loop header
LB: loop body
LE: loop exit
PB: predicated region body
PF: predicated region fallthrough
CT: control target
= control target key end

     0   :  { %v424_v0 = vmov 0   ;;  %v425_v6 = vmov 0.0   ;;  %vm426_vm0 = vmmov 0   ;;  %vm117_vm1 = vcmask 1042432   ;;  %s569_s2 = inlined_call_operand.vmem [shape: f32[19,1], index: 2, kind: input, shape index: {}]   ;;  %s570_s1 = inlined_call_operand.vmem [shape: f32[19,1], index: 1, kind: input, shape index: {}]   ;;  %s571_s8 = inlined_call_operand.<no memory space> [shape: f32[1,1], index: 8, kind: input, shape index: {}]   ;;  %s572_s4 = inlined_call_operand.vmem [shape: f32[18,1], index: 4, kind: input, shape index: {}]   ;;  %s573_s6 = inlined_call_operand.vmem [shape: f32[18,1], index: 6, kind: input, shape index: {}]   ;;  %s574_s7 = inlined_call_operand.vmem [shape: f32[18,1], index: 7, kind: input, shape index: {}]   ;;  %s575_s0 = inlined_call_operand.vmem [shape: f32[1,128], index: 0, kind: input, shape index: {}]   ;;  %s576_s3 = inlined_call_operand.vmem [shape: f32[18,19], index: 3, kind: input, shape index: {}]   ;;  %s577_s5 = inlined_call_operand.vmem [shape: f32[18,18], index: 5, kind: input, shape index: {}]   ;;  %s578_s9 = inlined_call_operand.vmem [shape: f32[1,128], index: 9, kind: output, shape index: {}]  }
   0x1   :  { %423 = vset.pattern.permute.xlu1 %v424_v0  ;;  %422 = vset.pattern.permute.xlu0 %v424_v0  ;;  %v64_v1 = vld [vmem:[%s569_s2 + $0x10] sm:$0x7]  ;;  %v14_v3 = vstv %s571_s8  ;;  %v36_v4 = vld [vmem:[%s570_s1 + $0x8] sm:$0xff]  ;;  %v35_v5 = vld [vmem:[%s570_s1] sm:$0xff]  ;;  %vm107_vm2 = vcmask 154624   ;;  %vm235_vm3 = vcmask 1041408  }
   0x2   :  { %v37_v2 = vld [vmem:[%s570_s1 + $0x10] sm:$0x7]  ;;  %77 = vperm.xlu1 %423, %v64_v1   ;;  %15 = vst [vmem:[#allocation2] sm:$0x1] %v14_v3  ;;  %389 = vmatprep.subr.mxu0 %v425_v6  ;;  %v63_v7 = vld [vmem:[%s569_s2 + $0x8] sm:$0xff]  ;;  %v62_v8 = vld [vmem:[%s569_s2] sm:$0xff] }
   0x3   :  { %50 = vperm.xlu0 %422, %v37_v2   ;;  %404 = vmatprep.subr.mxu1 %v425_v6  ;;  %v91_v9 = vld [vmem:[%s572_s4 + $0x10] sm:$0x3]  ;;  %v90_v10 = vld [vmem:[%s572_s4 + $0x8] sm:$0xff]  ;;  %v89_v11 = vld [vmem:[%s572_s4] sm:$0xff]  ;;  %vm225_vm4 = vcmask 146432  }
   0x4   :  { %395 = vmatprep.mubr.msk.f32.mxu0 %vm426_vm0, %v425_v6  ;;  %410 = vmatprep.mubr.msk.f32.mxu1 %vm426_vm0, %v425_v6  ;;  %v207_v12 = vld [vmem:[%s573_s6] sm:$0xff]  ;;  %v208_v13 = vld [vmem:[%s573_s6 + $0x8] sm:$0xff]  ;;  %v209_v14 = vld [vmem:[%s573_s6 + $0x10] sm:$0x3] }
   0x5   :  { %v322_v15 = vld [vmem:[%s574_s7] sm:$0xff]  ;;  %v323_v16 = vld [vmem:[%s574_s7 + $0x8] sm:$0xff]  ;;  %v324_v17 = vld [vmem:[%s574_s7 + $0x10] sm:$0x3] }
   0x6   :  { %40 = vperm.xlu1 %423, %v35_v5   ;;  %v368_v19 = vld [vmem:[%s575_s0] ss:$0 sm:$0xff]  ;;  %v87_v36 = vld [vmem:[%s576_s3 + $0x8] sm:$0xff]  ;;  %v88_v37 = vld [vmem:[%s576_s3 + $0x10] sm:$0x3] }
   0x7   :  { %45 = vperm.xlu0 %422, %v36_v4   ;;  %v86_v35 = vld [vmem:[%s576_s3] sm:$0xff]  ;;  %v205_v54 = vld [vmem:[%s577_s5 + $0x8] sm:$0xff]  ;;  %v206_v55 = vld [vmem:[%s577_s5 + $0x10] sm:$0x3] }
   0x8   :  { %v204_v53 = vld [vmem:[%s577_s5] sm:$0xff] }
   0x9   :  { %v352_v18 = vld [vmem:[#allocation2] sm:$0x1] }
   0xa   :  { %67 = vperm.xlu1 %423, %v62_v8  }
   0xb   :  { %72 = vperm.xlu0 %422, %v63_v7  }
   0xe   :  { %99 = vperm.xlu1 %423, %v90_v10  }
   0xf   :  { %104 = vperm.xlu0 %422, %v91_v9  }
  0x12   :  { %212 = vperm.xlu1 %423, %v207_v12  }
  0x13   :  { %94 = vperm.xlu0 %422, %v89_v11  }
  0x16   :  { %222 = vperm.xlu1 %423, %v209_v14  }
  0x17   :  { %217 = vperm.xlu0 %422, %v208_v13  }
  0x1a   :  { %332 = vperm.xlu1 %423, %v323_v16  }
  0x1b   :  { %327 = vperm.xlu0 %422, %v322_v15   ;;  %v358_v15 = vlaneseq }
  0x1e   :  { %355 = vperm.xlu1 %423, %v352_v18   ;;  %v359_v18 = vshrl.u32 %v358_v15, 7 }
  0x1f   :  { %337 = vperm.xlu0 %422, %v324_v17  }
  0x7d   :  { %v78_v20 = vpop.permute.xlu1 %77 }
  0x7e   :  { %v51_v21 = vpop.permute.xlu0 %50 }
  0x7f   :  { %v61_v22 = vmul.f32 %v368_v19, %v51_v21  ;;  %v360_v21 = vsub.s32 0, %v359_v18 }
  0x81   :  { %v82_v23 = vadd.f32 %v78_v20, %v61_v22  ;;  %v41_v25 = vpop.permute.xlu1 %40 }
  0x82   :  { %v46_v24 = vpop.permute.xlu0 %45  ;;  %v59_v28 = vmul.f32 %v368_v19, %v41_v25 }
  0x83   :  { %v85_v26 = vmax.f32 %v82_v23, 0.0  ;;  %v60_v27 = vmul.f32 %v368_v19, %v46_v24 }
  0x85   :  { %390 = vmatpush3.msk.msra.mxu0 %vm117_vm1, %v85_v26  ;;  %v68_v30 = vpop.permute.xlu1 %67 }
  0x86   :  { %v73_v29 = vpop.permute.xlu0 %72  ;;  %391 = vmatprep.subr.mxu0 %v425_v6  ;;  %v80_v32 = vadd.f32 %v68_v30, %v59_v28 }
  0x87   :  { %v81_v31 = vadd.f32 %v73_v29, %v60_v27 }
  0x88   :  { %v83_v34 = vmax.f32 %v80_v32, 0.0 }
  0x89   :  { %v84_v33 = vmax.f32 %v81_v31, 0.0  ;;  %v100_v43 = vpop.permute.xlu1 %99 }
  0x8a   :  { %v105_v40 = vpop.permute.xlu0 %104 }
  0x8b   :  { %392 = vmatpush3.msra.mxu0 %v84_v33 }
  0x8c   :  { %393 = vmatprep.subr.mxu0 %v425_v6 }
  0x8d   :  { %394 = vmatpush3.msra.mxu0 %v83_v34  ;;  %v213_v56 = vpop.permute.xlu1 %212 }
  0x8e   :  { %396 = vmatmul.mubr.msk.f32.vlgmr.msra.gmra.mxu0 %vm107_vm2, %v86_v35  ;;  %v95_v47 = vpop.permute.xlu0 %94 }
  0x8f   :  { %398 = vmatprep.mubr.msk.f32.mxu0 %vm426_vm0, %v425_v6 }
  0x91   :  { %v223_v60 = vpop.permute.xlu1 %222 }
  0x92   :  { %399 = vmatmul.mubr.msk.f32.gmra.mxu0 %vm107_vm2, %v87_v36  ;;  %v218_v57 = vpop.permute.xlu0 %217 }
  0x93   :  { %401 = vmatprep.mubr.msk.f32.mxu0 %vm426_vm0, %v425_v6 }
  0x95   :  { %v333_v5 = vpop.permute.xlu1 %332 }
  0x96   :  { %402 = vmatmul.mubr.msk.f32.gmra.mxu0 %vm107_vm2, %v88_v37  ;;  %v328_v0 = vpop.permute.xlu0 %327 }
  0x99   :  { %v356_v23 = vpop.permute.xlu1 %355 }
  0x9a   :  { %v338_v10 = vpop.permute.xlu0 %337  ;;  %v361_v25 = vrot.slane %v356_v23, %v360_v21 }
 0x14e   :  { %v187_v38 = vpop.f32.mrf.mxu0 }
 0x14f   :  { %v188_v49 = vadd.f32 %v187_v38, %v95_v47 }
 0x150   :  { %v397_v39 = vpop.f32.mrf.mxu0 }
 0x151   :  { %v201_v52 = vmax.f32 %v188_v49, 0.0 }
 0x152   :  { %v192_v41 = vpop.f32.mrf.mxu0 }
 0x153   :  { %v193_v45 = vadd.f32 %v192_v41, %v100_v43 }
 0x154   :  { %v400_v42 = vpop.f32.mrf.mxu0 }
 0x155   :  { %v202_v51 = vmax.f32 %v193_v45, 0.0 }
 0x156   :  { %v197_v44 = vpop.f32.mrf.mxu0 }
 0x157   :  { %v198_v46 = vadd.f32 %v197_v44, %v105_v40 }
 0x158   :  { %v403_v48 = vpop.f32.mrf.mxu0 }
 0x159   :  { %v203_v50 = vmax.f32 %v198_v46, 0.0 }
 0x15b   :  { %405 = vmatpush3.msk.msra.mxu1 %vm235_vm3, %v203_v50 }
 0x15c   :  { %406 = vmatprep.subr.mxu1 %v425_v6 }
 0x15d   :  { %407 = vmatpush3.msra.mxu1 %v202_v51 }
 0x15e   :  { %408 = vmatprep.subr.mxu1 %v425_v6 }
 0x15f   :  { %409 = vmatpush3.msra.mxu1 %v201_v52 }
 0x160   :  { %411 = vmatmul.mubr.msk.f32.vlgmr.msra.gmra.mxu1 %vm225_vm4, %v204_v53 }
 0x161   :  { %413 = vmatprep.mubr.msk.f32.mxu1 %vm426_vm0, %v425_v6 }
 0x164   :  { %414 = vmatmul.mubr.msk.f32.gmra.mxu1 %vm225_vm4, %v205_v54 }
 0x165   :  { %416 = vmatprep.mubr.msk.f32.mxu1 %vm426_vm0, %v425_v6 }
 0x168   :  { %417 = vmatmul.mubr.msk.f32.gmra.mxu1 %vm225_vm4, %v206_v55 }
 0x220   :  { %v305_v58 = vpop.f32.mrf.mxu1 }
 0x221   :  { %v306_v61 = vadd.f32 %v305_v58, %v213_v56 }
 0x222   :  { %v412_v59 = vpop.f32.mrf.mxu1 }
 0x223   :  { %v319_v3 = vmax.f32 %v306_v61, 0.0 }
 0x224   :  { %v310_v62 = vpop.f32.mrf.mxu1 }
 0x225   :  { %v311_v63 = vadd.f32 %v310_v62, %v218_v57  ;;  %v340_v11 = vmul.f32 %v328_v0, %v319_v3 }
 0x226   :  { %v415_v1 = vpop.f32.mrf.mxu1 }
 0x227   :  { %v320_v2 = vmax.f32 %v311_v63, 0.0 }
 0x228   :  { %v315_v4 = vpop.f32.mrf.mxu1 }
 0x229   :  { %v316_v6 = vadd.f32 %v315_v4, %v223_v60  ;;  %v341_v7 = vmul.f32 %v333_v5, %v320_v2 }
 0x22a   :  { %v418_v8 = vpop.f32.mrf.mxu1 }
 0x22b   :  { %v321_v9 = vmax.f32 %v316_v6, 0.0  ;;  %v343_v13 = vadd.f32 %v341_v7, %v340_v11 }
 0x22d   :  { %v342_v12 = vmul.f32 %v338_v10, %v321_v9 }
 0x22f   :  { %v344_v14 = vsel %vm235_vm3, %v342_v12, 0.0 }
 0x230   :  { %v345_v16 = vadd.f32 %v344_v14, %v343_v13 }
 0x232   :  { %v346_v17 = vrot.slane %v345_v16, 4 }
 0x234   :  { %v347_v19 = vadd.f32 %v346_v17, %v345_v16 }
 0x236   :  { %v348_v20 = vrot.slane %v347_v19, 2 }
 0x238   :  { %v349_v22 = vadd.f32 %v348_v20, %v347_v19 }
 0x23a   :  { %v350_v24 = vrot.slane %v349_v22, 1 }
 0x23c   :  { %v351_v26 = vadd.f32 %v350_v24, %v349_v22 }
 0x23e   :  { %v362_v27 = vadd.f32 %v361_v25, %v351_v26 }
 0x240   :  { %363 = vst [vmem:[%s578_s9] sm:$0x1] %v362_v27 }

</bundles_post_ra>
